<compile_context>
chip_gen: v5e
topology: v5e:2x2
jax: 0.10.0
libtpu: 0.0.40
codegen_flags: <defaults>
</compile_context>

<pallas_src>
import functools
import numpy as np

import jax
import jax.numpy as jnp
from jax.experimental import pallas as pl
from jax.experimental.pallas import tpu as pltpu


# ----------------------------------------------------------------------------
# Fused Pallas kernel (per-graph grid step)
# ----------------------------------------------------------------------------

def _maskgcn_fused_kernel(*refs, num_conv, inv_n, readout):
    """Whole MASKGCN forward for one graph.

    refs = (adj_block, sym_mask, feat, addf, sel,
            W0_pad, ..., W_{num_conv-1}_pad, Wpred_pad, bpred_pad,
            emb_out, pred_out)
    """
    adj_ref, mask_ref, feat_ref, addf_ref, sel_ref = refs[:5]
    w_refs = refs[5:5 + num_conv]
    w_pred_ref = refs[5 + num_conv]
    b_pred_ref = refs[6 + num_conv]
    emb_ref = refs[7 + num_conv]
    pred_ref = refs[8 + num_conv]

    # Masked adjacency for this graph: computed ONCE, reused by all layers.
    adj_m = jax.nn.sigmoid(adj_ref[...]) * mask_ref[...]              # [N, N]

    # Layer 0: adj_m @ (feat @ W0).  W0 is zero-padded to P lanes, so the
    # "concat" of additional features is an add into the zero-valued columns,
    # realized as a tiny selector matmul (keeps the HBM input lane-narrow).
    support = jnp.dot(feat_ref[...], w_refs[0][...],
                      preferred_element_type=jnp.float32)             # [N, P]
    h = jnp.dot(adj_m, support, preferred_element_type=jnp.float32)
    h = h + jnp.dot(addf_ref[...], sel_ref[...],
                    preferred_element_type=jnp.float32)
    # TODO(synk): nn.Dropout between layers -- inference-mode identity here.

    # Remaining conv layers (the nn.Identity layer is a no-op).
    for li in range(1, num_conv):
        support = jnp.dot(h, w_refs[li][...],
                          preferred_element_type=jnp.float32)         # [N, P]
        h = jnp.dot(adj_m, support, preferred_element_type=jnp.float32)

    emb_ref[...] = h.astype(emb_ref.dtype)                            # [N, P]

    # Readout: 'mean' as an MXU matmul with a 1/N row vector (keeps XLU free).
    n_nodes = adj_m.shape[0]
    if readout == "mean":
        ones_row = jnp.full((1, n_nodes), inv_n, dtype=jnp.float32)
        pooled = jnp.dot(ones_row, h, preferred_element_type=jnp.float32)
    else:  # 'max'
        pooled = jnp.max(h, axis=0, keepdims=True)

    pred_ref[...] = (jnp.dot(pooled, w_pred_ref[...],
                             preferred_element_type=jnp.float32)
                     + b_pred_ref[...]).astype(pred_ref.dtype)        # [1, P]


# ----------------------------------------------------------------------------
# Forward wrapper (glue: padding, per-graph blocks, pallas_call)
# ----------------------------------------------------------------------------

def maskgcn_forward(params, net_params, dense_adj, features, additional_features):
    n_nodes = net_params["num_nodes"]
    hidden = net_params["hidden_channels"]
    out_c = net_params["out_channels"]
    n_vars = net_params["n_vars"]
    add_w = net_params["additional_feature"]
    readout = net_params["readout"]

    total_nodes, in_c = features.shape
    num_graphs = total_nodes // n_nodes
    num_conv = len(params["gcn_weights"])
    f0 = hidden - add_w                       # layer-0 output width (pre-concat)

    # Lane-dense padded feature width (multiple of 128).
    P = 128 * pl.cdiv(max(hidden, out_c, n_vars), 128)

    # --- glue: build padded / per-graph operands ------------------------------
    raw = params["raw_edge_weight"]
    sym_mask = (raw + raw.T) / 2.0 + jnp.eye(n_nodes, dtype=raw.dtype)   # [N, N]

    # Diagonal blocks of the batched adjacency.  Cross-graph entries of the
    # dense adjacency are killed by the block-diagonal mask anyway.
    adj_blocks = jnp.stack(
        [jax.lax.dynamic_slice(dense_adj, (g * n_nodes, g * n_nodes),
                               (n_nodes, n_nodes))
         for g in range(num_graphs)])

    def pad2d(a, rows, cols):
        return (jnp.zeros((rows, cols), jnp.float32)
                .at[:a.shape[0], :a.shape[1]].set(a.astype(jnp.float32)))

    w_pads = [pad2d(params["gcn_weights"][0], in_c, P)]
    for w in params["gcn_weights"][1:]:
        w_pads.append(pad2d(w, P, P))
    w_pred_pad = pad2d(params["w_predict"], P, P)
    b_pred_pad = pad2d(params["b_predict"].reshape(1, -1), 1, P)

    # Additional features + selector that scatters them into columns [f0, f0+A).
    if add_w:
        addf = additional_features.astype(jnp.float32)                   # [T, A]
        sel = (jnp.zeros((add_w, P), jnp.float32)
               .at[jnp.arange(add_w), f0 + jnp.arange(add_w)].set(1.0))  # [A, P]
    else:
        addf = jnp.zeros((total_nodes, 1), jnp.float32)
        sel = jnp.zeros((1, P), jnp.float32)
    a_w = addf.shape[1]

    # --- the single fused Pallas call ------------------------------------------
    kernel = functools.partial(_maskgcn_fused_kernel, num_conv=num_conv,
                               inv_n=1.0 / n_nodes, readout=readout)

    w_specs = [pl.BlockSpec((in_c, P), lambda g: (0, 0))]
    w_specs += [pl.BlockSpec((P, P), lambda g: (0, 0))
                for _ in range(num_conv - 1)]

    emb_pad, pred_pad = pl.pallas_call(
        kernel,
        out_shape=(jax.ShapeDtypeStruct((total_nodes, P), jnp.float32),
                   jax.ShapeDtypeStruct((num_graphs, 1, P), jnp.float32)),
        grid=(num_graphs,),
        in_specs=[
            pl.BlockSpec((None, n_nodes, n_nodes), lambda g: (g, 0, 0)),  # adj block
            pl.BlockSpec((n_nodes, n_nodes), lambda g: (0, 0)),           # sym mask + I
            pl.BlockSpec((n_nodes, in_c), lambda g: (g, 0)),              # node features
            pl.BlockSpec((n_nodes, a_w), lambda g: (g, 0)),               # additional feats
            pl.BlockSpec((a_w, P), lambda g: (0, 0)),                     # concat selector
            *w_specs,                                                     # conv weights
            pl.BlockSpec((P, P), lambda g: (0, 0)),                       # W_predict
            pl.BlockSpec((1, P), lambda g: (0, 0)),                       # b_predict
        ],
        out_specs=(
            pl.BlockSpec((n_nodes, P), lambda g: (g, 0)),                 # embedding
            pl.BlockSpec((None, 1, P), lambda g: (g, 0, 0)),              # prediction
        ),
        compiler_params=pltpu.CompilerParams(
            dimension_semantics=("parallel",)),
    )(adj_blocks, sym_mask, features.astype(jnp.float32), addf, sel,
      *w_pads, w_pred_pad, b_pred_pad)

    embedding = emb_pad[:, :out_c]            # strip lane padding
    pred = pred_pad[:, 0, :n_vars]
    return pred, embedding


# ----------------------------------------------------------------------------
# Pure-JAX reference (mirrors the PyTorch forward exactly; for validation)
# ----------------------------------------------------------------------------

def maskgcn_reference(params, net_params, dense_adj, features, additional_features):
    n_nodes = net_params["num_nodes"]
    add_w = net_params["additional_feature"]
    readout = net_params["readout"]
    total_nodes = features.shape[0]
    num_graphs = total_nodes // n_nodes

    raw = params["raw_edge_weight"]
    mask = (raw + raw.T) / 2.0 + jnp.eye(n_nodes, dtype=raw.dtype)
    batch_mask = jax.scipy.linalg.block_diag(*([mask] * num_graphs))
    adj_masked = jax.nn.sigmoid(dense_adj) * batch_mask

    h = adj_masked @ (features @ params["gcn_weights"][0])
    if add_w:
        h = jnp.concatenate([h, additional_features], axis=-1)
    for w in params["gcn_weights"][1:]:
        h = adj_masked @ (h @ w)
    emb = h

    hg = h.reshape(num_graphs, n_nodes, -1)
    pooled = hg.mean(axis=1) if readout == "mean" else hg.max(axis=1)
    pred = pooled @ params["w_predict"] + params["b_predict"]
    return pred, emb


# ----------------------------------------------------------------------------
# Deterministic parameter / input construction
# ----------------------------------------------------------------------------

def init_params(key, net_params):
    in_c = net_params["in_channels"]
    hid = net_params["hidden_channels"]
    out_c = net_params["out_channels"]
    add = net_params["additional_feature"]
    n_layers = net_params["num_layers"]
    n_nodes = net_params["num_nodes"]
    n_vars = net_params["n_vars"]

    keys = jax.random.split(key, n_layers + 3)
    gcn_weights = []

    # layer0: in_channels -> hidden - additional_feature
    out0 = hid - add
    stdv0 = 1.0 / np.sqrt(out0)
    gcn_weights.append(jax.random.uniform(keys[0], (in_c, out0),
                                          minval=-stdv0, maxval=stdv0,
                                          dtype=jnp.float32))
    # layers 1..num_layers-1
    for i in range(1, n_layers):
        fout = hid if i != n_layers - 1 else out_c
        stdv = 1.0 / np.sqrt(fout)
        gcn_weights.append(jax.random.uniform(keys[i], (hid, fout),
                                              minval=-stdv, maxval=stdv,
                                              dtype=jnp.float32))

    # shared raw_edge_weight (last reset_parameters call wins in the PyTorch code)
    stdv_last = 1.0 / np.sqrt(out_c)
    raw_edge_weight = jax.random.uniform(keys[n_layers], (n_nodes, n_nodes),
                                         minval=-stdv_last, maxval=stdv_last,
                                         dtype=jnp.float32)

    # predict: nn.Linear(out_channels, n_vars)
    stdv_lin = 1.0 / np.sqrt(out_c)
    w_predict = jax.random.uniform(keys[n_layers + 1], (out_c, n_vars),
                                   minval=-stdv_lin, maxval=stdv_lin,
                                   dtype=jnp.float32)
    b_predict = jax.random.uniform(keys[n_layers + 2], (n_vars,),
                                   minval=-stdv_lin, maxval=stdv_lin,
                                   dtype=jnp.float32)

    return {
        "gcn_weights": gcn_weights,
        "raw_edge_weight": raw_edge_weight,
        "w_predict": w_predict,
        "b_predict": b_predict,
    }


def build_batched_ring_adjacency(num_nodes, num_graphs):
    """Dense adjacency of a batch of ring graphs (block-diagonal, symmetric 0/1)."""
    a = np.zeros((num_nodes, num_nodes), dtype=np.float32)
    for i in range(num_nodes):
        j = (i + 1) % num_nodes
        a[i, j] = 1.0
        a[j, i] = 1.0
    full = np.zeros((num_nodes * num_graphs,) * 2, dtype=np.float32)
    for b in range(num_graphs):
        s = b * num_nodes
        full[s:s + num_nodes, s:s + num_nodes] = a
    return jnp.asarray(full)


# ----------------------------------------------------------------------------
# Main
# ----------------------------------------------------------------------------

if __name__ == "__main__":
    net_params = {
        "in_channels": 4,
        "hidden_channels": 32,
        "out_channels": 16,
        "num_layers": 3,
        "dropout": 0.1,
        "num_nodes": 16,
        "additional_feature": 4,
        "readout": "mean",
        "activation": "relu",
        "n_vars": 3,
    }
    num_graphs = 2
    total_nodes = num_graphs * net_params["num_nodes"]

    key = jax.random.PRNGKey(0)
    k_param, k_feat, k_add = jax.random.split(key, 3)

    params = init_params(k_param, net_params)

    features = jax.random.normal(
        k_feat, (total_nodes, net_params["in_channels"]), dtype=jnp.float32)
    additional_features = jax.random.normal(
        k_add, (total_nodes, net_params["additional_feature"]), dtype=jnp.float32)

    dense_adj = build_batched_ring_adjacency(net_params["num_nodes"], num_graphs)

    fwd = jax.jit(lambda p, adj, x, ax: maskgcn_forward(p, net_params, adj, x, ax))
    pred, embedding = fwd(params, dense_adj, features, additional_features)
    pred = jax.block_until_ready(pred)
    embedding = jax.block_until_ready(embedding)

    assert pred.shape == (num_graphs, net_params["n_vars"])
    assert embedding.shape == (total_nodes, net_params["out_channels"])
    assert np.isfinite(np.asarray(pred)).all()
    assert np.isfinite(np.asarray(embedding)).all()

    # Numerical check against the pure-JAX reference of the PyTorch forward.
    pred_ref, emb_ref = maskgcn_reference(params, net_params, dense_adj,
                                          features, additional_features)
    np.testing.assert_allclose(np.asarray(pred), np.asarray(pred_ref),
                               rtol=1e-3, atol=1e-3)
    np.testing.assert_allclose(np.asarray(embedding), np.asarray(emb_ref),
                               rtol=1e-3, atol=1e-3)

    print("KERNEL_OK")
</pallas_src>

<mosaic_0001>
module attributes {stable_mosaic.version = 11 : i64} {
  func.func @_maskgcn_fused_kernel(%arg0: i32, %arg1: memref<1x16x16xf32, #tpu.memory_space<vmem>>, %arg2: memref<16x16xf32, #tpu.memory_space<vmem>>, %arg3: memref<16x4xf32, #tpu.memory_space<vmem>>, %arg4: memref<16x4xf32, #tpu.memory_space<vmem>>, %arg5: memref<4x128xf32, #tpu.memory_space<vmem>>, %arg6: memref<4x128xf32, #tpu.memory_space<vmem>>, %arg7: memref<128x128xf32, #tpu.memory_space<vmem>>, %arg8: memref<128x128xf32, #tpu.memory_space<vmem>>, %arg9: memref<128x128xf32, #tpu.memory_space<vmem>>, %arg10: memref<1x128xf32, #tpu.memory_space<vmem>>, %arg11: memref<16x128xf32, #tpu.memory_space<vmem>>, %arg12: memref<1x1x128xf32, #tpu.memory_space<vmem>>) attributes {dimension_semantics = [#tpu.dimension_semantics<parallel>], iteration_bounds = array<i64: 2>, scalar_prefetch = 0 : i64, scratch_operands = 0 : i64, tpu.core_type = #tpu.core_type<tc>, window_params = [{transform_indices = @transform_0, window_bounds = array<i64: 1, 16, 16>}, {pipeline_mode = #tpu.pipeline_mode<synchronous>, transform_indices = @transform_1, window_bounds = array<i64: 16, 16>}, {transform_indices = @transform_2, window_bounds = array<i64: 16, 4>}, {transform_indices = @transform_3, window_bounds = array<i64: 16, 4>}, {pipeline_mode = #tpu.pipeline_mode<synchronous>, transform_indices = @transform_4, window_bounds = array<i64: 4, 128>}, {pipeline_mode = #tpu.pipeline_mode<synchronous>, transform_indices = @transform_5, window_bounds = array<i64: 4, 128>}, {pipeline_mode = #tpu.pipeline_mode<synchronous>, transform_indices = @transform_6, window_bounds = array<i64: 128, 128>}, {pipeline_mode = #tpu.pipeline_mode<synchronous>, transform_indices = @transform_7, window_bounds = array<i64: 128, 128>}, {pipeline_mode = #tpu.pipeline_mode<synchronous>, transform_indices = @transform_8, window_bounds = array<i64: 128, 128>}, {pipeline_mode = #tpu.pipeline_mode<synchronous>, transform_indices = @transform_9, window_bounds = array<i64: 1, 128>}, {transform_indices = @transform_10, window_bounds = array<i64: 16, 128>}, {transform_indices = @transform_11, window_bounds = array<i64: 1, 1, 128>}]} {
    %c0 = arith.constant 0 : index
    %c0_0 = arith.constant 0 : index
    %c0_1 = arith.constant 0 : index
    %0 = vector.load %arg1[%c0, %c0_0, %c0_1] : memref<1x16x16xf32, #tpu.memory_space<vmem>>, vector<1x16x16xf32>
    %1 = vector.shape_cast %0 : vector<1x16x16xf32> to vector<16x16xf32>
    %2 = arith.negf %1 : vector<16x16xf32>
    %3 = math.exp %2 : vector<16x16xf32>
    %cst = arith.constant 1.000000e+00 : f32
    %4 = vector.broadcast %cst : f32 to vector<16x16xf32>
    %5 = arith.addf %4, %3 : vector<16x16xf32>
    %6 = arith.divf %4, %5 : vector<16x16xf32>
    %c0_2 = arith.constant 0 : index
    %c0_3 = arith.constant 0 : index
    %7 = vector.load %arg2[%c0_2, %c0_3] : memref<16x16xf32, #tpu.memory_space<vmem>>, vector<16x16xf32>
    %8 = arith.mulf %6, %7 : vector<16x16xf32>
    %c0_4 = arith.constant 0 : index
    %c0_5 = arith.constant 0 : index
    %9 = vector.load %arg3[%c0_4, %c0_5] : memref<16x4xf32, #tpu.memory_space<vmem>>, vector<16x4xf32>
    %c0_6 = arith.constant 0 : index
    %c0_7 = arith.constant 0 : index
    %10 = vector.load %arg6[%c0_6, %c0_7] : memref<4x128xf32, #tpu.memory_space<vmem>>, vector<4x128xf32>
    %cst_8 = arith.constant dense<0.000000e+00> : vector<16x128xf32>
    %11 = tpu.matmul %9, %10, %cst_8 {dimension_numbers = #tpu.dot_dimension_numbers<[1], [0], [0], [1], [0, 0, 1, 1], [], []>} : vector<16x4xf32>, vector<4x128xf32>, vector<16x128xf32> -> vector<16x128xf32>
    %cst_9 = arith.constant dense<0.000000e+00> : vector<16x128xf32>
    %12 = tpu.matmul %8, %11, %cst_9 {dimension_numbers = #tpu.dot_dimension_numbers<[1], [0], [0], [1], [0, 0, 1, 1], [], []>} : vector<16x16xf32>, vector<16x128xf32>, vector<16x128xf32> -> vector<16x128xf32>
    %c0_10 = arith.constant 0 : index
    %c0_11 = arith.constant 0 : index
    %13 = vector.load %arg4[%c0_10, %c0_11] : memref<16x4xf32, #tpu.memory_space<vmem>>, vector<16x4xf32>
    %c0_12 = arith.constant 0 : index
    %c0_13 = arith.constant 0 : index
    %14 = vector.load %arg5[%c0_12, %c0_13] : memref<4x128xf32, #tpu.memory_space<vmem>>, vector<4x128xf32>
    %cst_14 = arith.constant dense<0.000000e+00> : vector<16x128xf32>
    %15 = tpu.matmul %13, %14, %cst_14 {dimension_numbers = #tpu.dot_dimension_numbers<[1], [0], [0], [1], [0, 0, 1, 1], [], []>} : vector<16x4xf32>, vector<4x128xf32>, vector<16x128xf32> -> vector<16x128xf32>
    %16 = arith.addf %12, %15 : vector<16x128xf32>
    %c0_15 = arith.constant 0 : index
    %c0_16 = arith.constant 0 : index
    %17 = vector.load %arg7[%c0_15, %c0_16] : memref<128x128xf32, #tpu.memory_space<vmem>>, vector<128x128xf32>
    %cst_17 = arith.constant dense<0.000000e+00> : vector<16x128xf32>
    %18 = tpu.matmul %16, %17, %cst_17 {dimension_numbers = #tpu.dot_dimension_numbers<[1], [0], [0], [1], [0, 0, 1, 1], [], []>} : vector<16x128xf32>, vector<128x128xf32>, vector<16x128xf32> -> vector<16x128xf32>
    %cst_18 = arith.constant dense<0.000000e+00> : vector<16x128xf32>
    %19 = tpu.matmul %8, %18, %cst_18 {dimension_numbers = #tpu.dot_dimension_numbers<[1], [0], [0], [1], [0, 0, 1, 1], [], []>} : vector<16x16xf32>, vector<16x128xf32>, vector<16x128xf32> -> vector<16x128xf32>
    %c0_19 = arith.constant 0 : index
    %c0_20 = arith.constant 0 : index
    %20 = vector.load %arg8[%c0_19, %c0_20] : memref<128x128xf32, #tpu.memory_space<vmem>>, vector<128x128xf32>
    %cst_21 = arith.constant dense<0.000000e+00> : vector<16x128xf32>
    %21 = tpu.matmul %19, %20, %cst_21 {dimension_numbers = #tpu.dot_dimension_numbers<[1], [0], [0], [1], [0, 0, 1, 1], [], []>} : vector<16x128xf32>, vector<128x128xf32>, vector<16x128xf32> -> vector<16x128xf32>
    %cst_22 = arith.constant dense<0.000000e+00> : vector<16x128xf32>
    %22 = tpu.matmul %8, %21, %cst_22 {dimension_numbers = #tpu.dot_dimension_numbers<[1], [0], [0], [1], [0, 0, 1, 1], [], []>} : vector<16x16xf32>, vector<16x128xf32>, vector<16x128xf32> -> vector<16x128xf32>
    %c0_23 = arith.constant 0 : index
    %c0_24 = arith.constant 0 : index
    %23 = vector.load %arg11[%c0_23, %c0_24] : memref<16x128xf32, #tpu.memory_space<vmem>>, vector<16x128xf32>
    tpu.vector_store %arg11[%c0_23, %c0_24], %22 {strides = array<i32>} : memref<16x128xf32, #tpu.memory_space<vmem>>, vector<16x128xf32>,
    %cst_25 = arith.constant 6.250000e-02 : f32
    %24 = vector.broadcast %cst_25 : f32 to vector<1x16xf32>
    %cst_26 = arith.constant dense<0.000000e+00> : vector<1x128xf32>
    %25 = tpu.matmul %24, %22, %cst_26 {dimension_numbers = #tpu.dot_dimension_numbers<[1], [0], [0], [1], [0, 0, 1, 1], [], []>} : vector<1x16xf32>, vector<16x128xf32>, vector<1x128xf32> -> vector<1x128xf32>
    %c0_27 = arith.constant 0 : index
    %c0_28 = arith.constant 0 : index
    %26 = vector.load %arg9[%c0_27, %c0_28] : memref<128x128xf32, #tpu.memory_space<vmem>>, vector<128x128xf32>
    %cst_29 = arith.constant dense<0.000000e+00> : vector<1x128xf32>
    %27 = tpu.matmul %25, %26, %cst_29 {dimension_numbers = #tpu.dot_dimension_numbers<[1], [0], [0], [1], [0, 0, 1, 1], [], []>} : vector<1x128xf32>, vector<128x128xf32>, vector<1x128xf32> -> vector<1x128xf32>
    %c0_30 = arith.constant 0 : index
    %c0_31 = arith.constant 0 : index
    %28 = vector.load %arg10[%c0_30, %c0_31] : memref<1x128xf32, #tpu.memory_space<vmem>>, vector<1x128xf32>
    %29 = arith.addf %27, %28 : vector<1x128xf32>
    %c0_32 = arith.constant 0 : index
    %c0_33 = arith.constant 0 : index
    %c0_34 = arith.constant 0 : index
    %30 = vector.load %arg12[%c0_32, %c0_33, %c0_34] : memref<1x1x128xf32, #tpu.memory_space<vmem>>, vector<1x1x128xf32>
    %31 = vector.shape_cast %30 : vector<1x1x128xf32> to vector<1x128xf32>
    %32 = vector.shape_cast %29 : vector<1x128xf32> to vector<1x1x128xf32>
    tpu.vector_store %arg12[%c0_32, %c0_33, %c0_34], %32 {strides = array<i32>} : memref<1x1x128xf32, #tpu.memory_space<vmem>>, vector<1x1x128xf32>,
    return
  }
  func.func @transform_0(%arg0: i32) -> (i32, i32, i32) {
    %c0_i32 = arith.constant 0 : i32
    %c0_i32_0 = arith.constant 0 : i32
    %c0_i32_1 = arith.constant 0 : i32
    return %arg0, %c0_i32, %c0_i32_0 : i32, i32, i32
  }
  func.func @transform_1(%arg0: i32) -> (i32, i32) {
    %c0_i32 = arith.constant 0 : i32
    %c0_i32_0 = arith.constant 0 : i32
    %c0_i32_1 = arith.constant 0 : i32
    return %c0_i32, %c0_i32_0 : i32, i32
  }
  func.func @transform_2(%arg0: i32) -> (i32, i32) {
    %c0_i32 = arith.constant 0 : i32
    %c0_i32_0 = arith.constant 0 : i32
    return %arg0, %c0_i32 : i32, i32
  }
  func.func @transform_3(%arg0: i32) -> (i32, i32) {
    %c0_i32 = arith.constant 0 : i32
    %c0_i32_0 = arith.constant 0 : i32
    return %arg0, %c0_i32 : i32, i32
  }
  func.func @transform_4(%arg0: i32) -> (i32, i32) {
    %c0_i32 = arith.constant 0 : i32
    %c0_i32_0 = arith.constant 0 : i32
    %c0_i32_1 = arith.constant 0 : i32
    return %c0_i32, %c0_i32_0 : i32, i32
  }
  func.func @transform_5(%arg0: i32) -> (i32, i32) {
    %c0_i32 = arith.constant 0 : i32
    %c0_i32_0 = arith.constant 0 : i32
    %c0_i32_1 = arith.constant 0 : i32
    return %c0_i32, %c0_i32_0 : i32, i32
  }
  func.func @transform_6(%arg0: i32) -> (i32, i32) {
    %c0_i32 = arith.constant 0 : i32
    %c0_i32_0 = arith.constant 0 : i32
    %c0_i32_1 = arith.constant 0 : i32
    return %c0_i32, %c0_i32_0 : i32, i32
  }
  func.func @transform_7(%arg0: i32) -> (i32, i32) {
    %c0_i32 = arith.constant 0 : i32
    %c0_i32_0 = arith.constant 0 : i32
    %c0_i32_1 = arith.constant 0 : i32
    return %c0_i32, %c0_i32_0 : i32, i32
  }
  func.func @transform_8(%arg0: i32) -> (i32, i32) {
    %c0_i32 = arith.constant 0 : i32
    %c0_i32_0 = arith.constant 0 : i32
    %c0_i32_1 = arith.constant 0 : i32
    return %c0_i32, %c0_i32_0 : i32, i32
  }
  func.func @transform_9(%arg0: i32) -> (i32, i32) {
    %c0_i32 = arith.constant 0 : i32
    %c0_i32_0 = arith.constant 0 : i32
    %c0_i32_1 = arith.constant 0 : i32
    return %c0_i32, %c0_i32_0 : i32, i32
  }
  func.func @transform_10(%arg0: i32) -> (i32, i32) {
    %c0_i32 = arith.constant 0 : i32
    %c0_i32_0 = arith.constant 0 : i32
    return %arg0, %c0_i32 : i32, i32
  }
  func.func @transform_11(%arg0: i32) -> (i32, i32, i32) {
    %c0_i32 = arith.constant 0 : i32
    %c0_i32_0 = arith.constant 0 : i32
    %c0_i32_1 = arith.constant 0 : i32
    return %arg0, %c0_i32, %c0_i32_0 : i32, i32, i32
  }
}

</mosaic_0001>

<bundles_post_ra>
// kernel: _lambda_.1
= control target key start
LH: loop header
LB: loop body
LE: loop exit
PB: predicated region body
PF: predicated region fallthrough
CT: control target
= control target key end

     0   :  { %s1400_s0 = inlined_call_operand.vmem [shape: f32[2,16,16], index: 0, kind: input, shape index: {}]   ;;  %s1401_s1 = inlined_call_operand.vmem [shape: f32[16,16], index: 1, kind: input, shape index: {}]   ;;  %s1402_s2 = inlined_call_operand.vmem [shape: f32[32,4], index: 2, kind: input, shape index: {}]   ;;  %s1403_s3 = inlined_call_operand.vmem [shape: f32[32,4], index: 3, kind: input, shape index: {}]   ;;  %s1404_s4 = inlined_call_operand.vmem [shape: f32[4,128], index: 4, kind: input, shape index: {}]   ;;  %s1405_s5 = inlined_call_operand.vmem [shape: f32[4,128], index: 5, kind: input, shape index: {}]   ;;  %s1406_s6 = inlined_call_operand.vmem [shape: f32[128,128], index: 6, kind: input, shape index: {}]   ;;  %s1407_s7 = inlined_call_operand.vmem [shape: f32[128,128], index: 7, kind: input, shape index: {}]   ;;  %s1408_s8 = inlined_call_operand.vmem [shape: f32[128,128], index: 8, kind: input, shape index: {}]   ;;  %s1409_s9 = inlined_call_operand.vmem [shape: f32[1,128], index: 9, kind: input, shape index: {}]   ;;  %s1410_s10 = inlined_call_operand.vmem [shape: f32[32,128], index: 10, kind: output, shape index: {0}]   ;;  %s1411_s11 = inlined_call_operand.hbm [shape: f32[2,1,128], index: 11, kind: output, shape index: {1}]  }
   0x1   :  { %1412 = sst [smem:[#allocation5_spill]] %s1400_s0 }
   0x2   :  { %1413 = sst [smem:[#allocation6_spill]] %s1401_s1 }
   0x3   :  { %17 = vsyncpa [#allocation3], 0 }
   0x4   :  { %19 = vsyncpa [#allocation3 + $0x1], 0  ;;  %s1106_s17 = smov 0   ;;  %s1108_s18 = smov 0  }
   0x5   :  { %s1110_s19 = smov 0   ;;  %s1112_s20 = smov 0  }
   0x6 LB: > { %s1127_s21 = sadd.s32 4294967295, %s1043_s20   ;;  %s901_s22 = sadd.s32 4294967294, %s1043_s20   ;;  %s1043_s20 = sphi %s1112_s20, %s1425_s20   ;;  %s1039_s19 = sphi %s1110_s19, %s1424_s19   ;;  %s1035_s18 = sphi %s1108_s18, %s1423_s18   ;;  %s1031_s17 = sphi %s1106_s17, %s1422_s17  }
   0x7   : > { %s1131_s23 = sadd.s32 1, %s1043_s20   ;;  %s283_s24 = sadd.s32 1, %s1039_s19 }
   0x8   : > { %s280_s25 = ssub.s32 %s1043_s20, %s1131_s23  ;;  %p293_p0 = scmp.ne.s32.totalorder %s1039_s19, %s1035_s18 }
   0x9   : > { %p281_p1 = scmp.eq.s32.totalorder %s280_s25, 0  ;;  %p294_p2 = scmp.eq.s32.totalorder %s1127_s21, 1 }
   0xa   : > { %p299_p3 = scmp.ne.s32.totalorder %s1035_s18, %s1031_s17  ;;  %p300_p4 = scmp.eq.s32.totalorder %s901_s22, 1 }
   0xb   : > { %s1142_s26 = scalar_select %p281_p1, %s1039_s19, %s283_s24  }
   0xc   : > { %p1144_p5 = por %p294_p2, %p293_p0  ;;  %p1148_p6 = por %p300_p4, %p299_p3 }
   0xd   : > { %p904_p7 = scmp.ge.s32.totalorder %s1043_s20, 1  ;;  %p365_p8 = scmp.lt.s32.totalorder %s1043_s20, 3 }
   0xf   : > { %p366_p9 = pnand %p904_p7, %p365_p8 }
  0x10   : > { %s907_s12 = sshll.u32 (!%p366_p9), %s1127_s21, 1  ;;  %p419_p11 = scmp.lt.s32.totalorder (!%p366_p9), %s1127_s21, 1 }
  0x11   : > { %369 = sbr.rel (%p366_p9) target bundleno = 1103 (0x44f), region = 60  ;;  %p425_p10 = scmp.lt.s32.totalorder (!%p366_p9), %s907_s12, 3 }
  0x12   : > { %s1416_s0 = sld [smem:[#allocation5_spill]] (!%p366_p9) }
  0x13   : > { %s1421_s1 = sld [smem:[#allocation6_spill]] (!%p366_p9) }
  0x16   : > { %v488_v0 = vld [vmem:[%s1405_s5] sm:$0xf]  ;;  %vm496_vm0 = vcmask 1043456   ;;  %s1427_s12 = smov (!%p425_p10, %s907_s12), 3  ;;  %vm489_vm1 = vcmask 31744   ;;  %v603_v13 = vld [vmem:[%s1406_s6 + $0x78] sm:$0xff] }
  0x17   : > { %915 = vmatpush.msk.msra.mxu0 %vm496_vm0, %v488_v0  ;;  %s1159_s13 = sshll.u32 %s1427_s12, 3  ;;  %v525_v11 = vld [vmem:[%s1404_s4] sm:$0xf]  ;;  %v602_v14 = vld [vmem:[%s1406_s6 + $0x70] sm:$0xff]  ;;  %604 = vmatpush.msra.mxu3 %v603_v13  ;;  %v601_v16 = vld [vmem:[%s1406_s6 + $0x68] sm:$0xff]  ;;  %vm558_vm10 = vcmask 130048  }
  0x18   : > { %s428_s16 = scalar_lea.vmem %s1402_s2, %s1159_s13  ;;  %s434_s15 = scalar_lea.vmem %s1403_s3, %s1159_s13  ;;  %918 = vmatpush.msk.msra.mxu1 %vm496_vm0, %v525_v11  ;;  %v600_v18 = vld [vmem:[%s1406_s6 + $0x60] sm:$0xff]  ;;  %v599_v22 = vld [vmem:[%s1406_s6 + $0x58] sm:$0xff]  ;;  %v598_v23 = vld [vmem:[%s1406_s6 + $0x50] sm:$0xff] }
  0x19   : > { %v486_v1 = vld [vmem:[%s428_s16] sm:$0xff]  ;;  %v487_v2 = vld [vmem:[%s428_s16 + $0x8] sm:$0xff]  ;;  %s420_s22 = scalar_select %p419_p11, %s1127_s21, 1  ;;  %605 = vmatpush.msra.mxu3 %v602_v14  ;;  %v595_v30 = vld [vmem:[%s1406_s6 + $0x38] sm:$0xff] }
  0x1a   : > { %916 = vmatmul.msk.f32.vlgmr.msra.gmra.mxu0 %vm489_vm1, %v486_v1  ;;  %v523_v12 = vld [vmem:[%s434_s15] sm:$0xff]  ;;  %v524_v19 = vld [vmem:[%s434_s15 + $0x8] sm:$0xff]  ;;  %v594_v31 = vld [vmem:[%s1406_s6 + $0x30] sm:$0xff]  ;;  %s440_s14 = scalar_lea.vmem %s1410_s10, %s1159_s13  ;;  %s417_s15 = sand.u32 1, %s1035_s18  }
  0x1b   : > { %s930_s24 = sshll.u32 %s420_s22, 4  ;;  %919 = vmatmul.msk.f32.vlgmr.msra.gmra.mxu1 %vm489_vm1, %v523_v12  ;;  %606 = vmatpush.msra.mxu3 %v601_v16  ;;  %v597_v26 = vld [vmem:[%s1406_s6 + $0x48] sm:$0xff]  ;;  %v596_v27 = vld [vmem:[%s1406_s6 + $0x40] sm:$0xff]  ;;  %v591_v47 = vld [vmem:[%s1406_s6 + $0x18] sm:$0xff]  ;;  %s793_s22 = scalar_lea.hbm %s1411_s11, %s1127_s21 }
  0x1c   : > { %s423_s30 = scalar_lea.vmem %s1416_s0, %s930_s24  ;;  %v593_v39 = vld [vmem:[%s1406_s6 + $0x28] sm:$0xff]  ;;  %v592_v42 = vld [vmem:[%s1406_s6 + $0x20] sm:$0xff]  ;;  %v590_v48 = vld [vmem:[%s1406_s6 + $0x10] sm:$0xff]  ;;  %s418_s25 = scalar_lea.vmem [#allocation2], %s417_s15 }
  0x1d   : > { %v442_v3 = vld [vmem:[%s423_s30] sm:$0xff]  ;;  %v443_v4 = vld [vmem:[%s423_s30 + $0x8] sm:$0xff]  ;;  %607 = vmatpush.msra.mxu3 %v600_v18  ;;  %v665_v0 = vld [vmem:[%s1407_s7 + $0x78] sm:$0xff]  ;;  %s795_s29 = sshll.u32 %s418_s25, 4  ;;  %s781_s13 = scalar_lea.sflag [#allocation3], %s417_s15  ;;  %s796_s29 = int_to_ptr.vmem [resolvable:$true] %s795_s29 }
  0x1e   : > { %v913_v5 = vmul.f32 -1.442695, %v442_v3  ;;  %v914_v6 = vmul.f32 -1.442695, %v443_v4  ;;  %v482_v50 = vld [vmem:[%s1421_s1] sm:$0xff]  ;;  %v483_v52 = vld [vmem:[%s1421_s1 + $0x8] sm:$0xff]  ;;  %666 = vmatpush.msrb.mxu1 %v665_v0 }
  0x1f   : > { %608 = vmatpush.msra.mxu3 %v599_v22  ;;  %v589_v56 = vld [vmem:[%s1406_s6 + $0x8] sm:$0xff]  ;;  %v588_v57 = vld [vmem:[%s1406_s6] sm:$0xff]  ;;  %v664_v1 = vld [vmem:[%s1407_s7 + $0x70] sm:$0xff]  ;;  %s797_s1 = sshll.u32 %s793_s22, 4  ;;  %s1001_s0 = scalar_lea.hbm %s1411_s11, 2  ;;  %s798_s1 = int_to_ptr.hbm [resolvable:$true] %s797_s1 }
  0x20   : > { %973 = vpow2.f32 %v913_v5  ;;  %667 = vmatpush.msrb.mxu1 %v664_v1  ;;  %v662_v3 = vld [vmem:[%s1407_s7 + $0x60] sm:$0xff]  ;;  %v661_v4 = vld [vmem:[%s1407_s7 + $0x58] sm:$0xff]  ;;  %v660_v5 = vld [vmem:[%s1407_s7 + $0x50] sm:$0xff]  ;;  %s995_s30 = sshra.s32 %s798_s1, 4  ;;  %s996_s30 = int_to_ptr.hbm [resolvable:$true] %s995_s30 }
  0x21   : > { %975 = vpow2.f32 %v914_v6  ;;  %609 = vmatpush.msra.mxu3 %v598_v23  ;;  %v659_v6 = vld [vmem:[%s1407_s7 + $0x48] sm:$0xff]  ;;  %v654_v13 = vld [vmem:[%s1407_s7 + $0x20] sm:$0xff]  ;;  %v653_v14 = vld [vmem:[%s1407_s7 + $0x18] sm:$0xff]  ;;  %s997_s12 = scalar_lea.hbm %s996_s30, 1  ;;  %p1002_p1 = scmp.lt.s32.totalorder %s996_s30, %s1411_s11 }
  0x22   : > { %917 = vmatmul.msk.f32.gmra.mxu0 %vm489_vm1, %v487_v2  ;;  %v663_v2 = vld [vmem:[%s1407_s7 + $0x68] sm:$0xff]  ;;  %v752_v22 = vld [vmem:[%s1408_s8 + $0x78] sm:$0xff]  ;;  %v751_v23 = vld [vmem:[%s1408_s8 + $0x70] sm:$0xff]  ;;  %p998_p12 = scmp.ne.s32.totalorder %s996_s30, %s997_s12  ;;  %p1003_p2 = scmp.lt.s32.totalorder %s1001_s0, %s997_s12 }
  0x23   : > { %920 = vmatmul.msk.f32.gmra.mxu1 %vm489_vm1, %v524_v19  ;;  %610 = vmatpush.msra.mxu3 %v597_v26  ;;  %v655_v11 = vld [vmem:[%s1407_s7 + $0x28] sm:$0xff]  ;;  %v748_v26 = vld [vmem:[%s1408_s8 + $0x58] sm:$0xff]  ;;  %v737_v40 = vld [vmem:[%s1408_s8] sm:$0xff] }
  0x24   : > { %668 = vmatpush.msrb.mxu1 %v663_v2  ;;  %v651_v16 = vld [vmem:[%s1407_s7 + $0x8] sm:$0xff]  ;;  %v740_v35 = vld [vmem:[%s1408_s8 + $0x18] sm:$0xff]  ;;  %p999_p13 = pnand %p998_p12, %p1144_p5  ;;  %p1004_p3 = por %p1003_p2, %p1002_p1 }
  0x25   : > { %611 = vmatpush.msra.mxu3 %v596_v27  ;;  %v747_v27 = vld [vmem:[%s1408_s8 + $0x50] sm:$0xff] }
  0x26   : > { %v974_v7 = vpop.eup %973  ;;  %669 = vmatpush.msrb.mxu1 %v662_v3  ;;  %p1000_p0 = pneg %p999_p13 }
  0x27   : > { %v976_v8 = vpop.eup %975  ;;  %v450_v9 = vadd.f32 1.0, %v974_v7  ;;  %612 = vmatpush.msra.mxu3 %v595_v30  ;;  %v744_v30 = vld [vmem:[%s1408_s8 + $0x38] sm:$0xff] }
  0x28   : > { %v451_v10 = vadd.f32 1.0, %v976_v8  ;;  %670 = vmatpush.msrb.mxu1 %v661_v4  ;;  %v658_v8 = vld [vmem:[%s1407_s7 + $0x40] sm:$0xff]  ;;  %p1005_p4 = pnand %p1004_p3, %p1000_p0 }
  0x29   : > { %977 = vrcp.f32 %v450_v9  ;;  %vm457_vm2 = vweird.f32 %v450_v9  ;;  %v463_v32 = vand.u32 2147483648, %v450_v9  ;;  %v461_v36 = vand.u32 2147483647, %v450_v9  ;;  %613 = vmatpush.msra.mxu3 %v594_v31  ;;  %v743_v31 = vld [vmem:[%s1408_s8 + $0x30] sm:$0xff] }
  0x2a   : > { %979 = vrcp.f32 %v451_v10  ;;  %vm472_vm4 = vweird.f32 %v451_v10  ;;  %v478_v33 = vand.u32 2147483648, %v451_v10  ;;  %v476_v38 = vand.u32 2147483647, %v451_v10  ;;  %671 = vmatpush.msrb.mxu1 %v660_v5 }
  0x2b   : > { %v464_v43 = vor.u32 1.1754944e-38, %v463_v32  ;;  %614 = vmatpush.msra.mxu3 %v593_v39  ;;  %vm462_vm8 = vcmp.eq.f32.partialorder %v461_v36, 8.507059e+37  ;;  %v742_v32 = vld [vmem:[%s1408_s8 + $0x28] sm:$0xff]  ;;  %v739_v36 = vld [vmem:[%s1408_s8 + $0x10] sm:$0xff]  ;;  %v1045_v39 = vmov 0.0625  }
  0x2c   : > { %v479_v44 = vor.u32 1.1754944e-38, %v478_v33  ;;  %vm477_vm9 = vcmp.eq.f32.partialorder %v476_v38, 8.507059e+37  ;;  %672 = vmatpush.msrb.mxu1 %v659_v6 }
  0x2d   : > { %615 = vmatpush.msra.mxu3 %v592_v42  ;;  %v753_v42 = vld [vmem:[%s1409_s9] sm:$0x1] }
  0x2e   : > { %673 = vmatpush.msrb.mxu1 %v658_v8 }
  0x2f   : > { %v978_v15 = vpop.eup %977  ;;  %616 = vmatpush.msra.mxu3 %v591_v47 }
  0x30   : > { %v980_v17 = vpop.eup %979  ;;  %v453_v20 = vmul.f32 %v978_v15, %v450_v9  ;;  %vm458_vm3 = vweird.f32 %v978_v15  ;;  %v657_v9 = vld [vmem:[%s1407_s7 + $0x38] sm:$0xff] }
  0x31   : > { %v468_v21 = vmul.f32 %v980_v17, %v451_v10  ;;  %vm473_vm5 = vweird.f32 %v980_v17  ;;  %vm1212_vm6 = vmor %vm457_vm2, %vm458_vm3  ;;  %617 = vmatpush.msra.mxu3 %v590_v48  ;;  %v656_v10 = vld [vmem:[%s1407_s7 + $0x30] sm:$0xff]  ;;  %674 = vmatpush.msrb.mxu1 %v657_v9 }
  0x32   : > { %v454_v24 = vsub.f32 1.0, %v453_v20  ;;  %vm1219_vm7 = vmor %vm472_vm4, %vm473_vm5 }
  0x33   : > { %v469_v25 = vsub.f32 1.0, %v468_v21  ;;  %618 = vmatpush.msra.mxu3 %v589_v56  ;;  %675 = vmatpush.msrb.mxu1 %v656_v10 }
  0x34   : > { %v455_v28 = vmul.f32 %v978_v15, %v454_v24  ;;  %v750_v24 = vld [vmem:[%s1408_s8 + $0x68] sm:$0xff] }
  0x35   : > { %v470_v29 = vmul.f32 %v980_v17, %v469_v25  ;;  %619 = vmatpush.msra.mxu3 %v588_v57  ;;  %676 = vmatpush.msrb.mxu1 %v655_v11  ;;  %v749_v25 = vld [vmem:[%s1408_s8 + $0x60] sm:$0xff] }
  0x36   : > { %v456_v34 = vadd.f32 %v978_v15, %v455_v28  ;;  %v746_v28 = vld [vmem:[%s1408_s8 + $0x48] sm:$0xff] }
  0x37   : > { %v471_v37 = vadd.f32 %v980_v17, %v470_v29  ;;  %677 = vmatpush.msrb.mxu1 %v654_v13  ;;  %v745_v29 = vld [vmem:[%s1408_s8 + $0x40] sm:$0xff] }
  0x38   : > { %v460_v45 = vsel %vm1212_vm6, %v978_v15, %v456_v34  ;;  %v652_v15 = vld [vmem:[%s1407_s7 + $0x10] sm:$0xff]  ;;  %v741_v34 = vld [vmem:[%s1408_s8 + $0x20] sm:$0xff] }
  0x39   : > { %v475_v46 = vsel %vm1219_vm7, %v980_v17, %v471_v37  ;;  %v465_v49 = vsel %vm462_vm8, %v464_v43, %v460_v45  ;;  %678 = vmatpush.msrb.mxu1 %v653_v14  ;;  %v650_v17 = vld [vmem:[%s1407_s7] sm:$0xff]  ;;  %v738_v37 = vld [vmem:[%s1408_s8 + $0x8] sm:$0xff] }
  0x3a   : > { %v480_v51 = vsel %vm477_vm9, %v479_v44, %v475_v46  ;;  %v1242_v54 = vmul.f32 %v482_v50, %v465_v49 }
  0x3b   : > { %v1244_v55 = vmul.f32 %v483_v52, %v480_v51  ;;  %679 = vmatpush.msrb.mxu1 %v652_v15 }
  0x3d   : > { %680 = vmatpush.msrb.mxu1 %v651_v16 }
  0x3f   : > { %681 = vmatpush.msrb.mxu1 %v650_v17 }
  0x97   : > { %v517_v41 = vpop.f32.mrf.mxu0 }
  0x98   : > { %v552_v58 = vpop.f32.mrf.mxu1 }
  0x9f   : > { %v520_v53 = vpop.f32.mrf.mxu0 }
  0xa0   : > { %579 = vmatpush.msrb.mxu0 %v520_v53  ;;  %931 = vmatpush.msra.mxu2 %v520_v53  ;;  %v555_v61 = vpop.f32.mrf.mxu1 }
  0xa2   : > { %580 = vmatpush.msrb.mxu0 %v517_v41  ;;  %932 = vmatpush.msra.mxu2 %v517_v41 }
  0xa3   : > { %921 = vmatmul.msk.f32.vlgmr.msrb.gmra.mxu0 %vm558_vm10, %v1242_v54  ;;  %922 = vmatmul.msk.f32.vlgmr.msra.gmra.mxu2 %vm558_vm10, %v1244_v55 }
 0x120   : > { %v582_v59 = vpop.f32.mrf.mxu0 }
 0x121   : > { %v583_v60 = vadd.f32 %v582_v59, %v552_v58 }
 0x123   : > { %620 = vmatmul.f32.vlgmr.msra.gmra.mxu3 %v583_v60 }
 0x126   : > { %v585_v62 = vpop.f32.mrf.mxu2 }
 0x127   : > { %v586_v63 = vadd.f32 %v585_v62, %v555_v61 }
 0x12b   : > { %623 = vmatmul.f32.gmra.mxu3 %v586_v63 }
 0x1a6   : > { %v621_v7 = vpop.f32.mrf.mxu3 }
 0x1ae   : > { %v624_v12 = vpop.f32.mrf.mxu3 }
 0x1af   : > { %641 = vmatpush.msra.mxu0 %v624_v12 }
 0x1b1   : > { %642 = vmatpush.msra.mxu0 %v621_v7 }
 0x1b2   : > { %923 = vmatmul.msk.f32.vlgmr.msra.gmra.mxu0 %vm558_vm10, %v1242_v54 }
 0x1ba   : > { %924 = vmatmul.msk.f32.gmra.mxu0 %vm558_vm10, %v1244_v55 }
 0x22f   : > { %v644_v18 = vpop.f32.mrf.mxu0 }
 0x230   : > { %682 = vmatmul.f32.vlgmr.msrb.gmra.mxu1 %v644_v18 }
 0x237   : > { %v647_v19 = vpop.f32.mrf.mxu0 }
 0x238   : > { %685 = vmatmul.f32.gmra.mxu1 %v647_v19 }
 0x2ad   : > { %v683_v20 = vpop.f32.mrf.mxu1 }
 0x2b5   : > { %v686_v21 = vpop.f32.mrf.mxu1 }
 0x2b6   : > { %703 = vmatpush.msrb.mxu2 %v686_v21 }
 0x2b8   : > { %704 = vmatpush.msrb.mxu2 %v683_v20 }
 0x2b9   : > { %925 = vmatmul.msk.f32.vlgmr.msrb.gmra.mxu2 %vm558_vm10, %v1242_v54 }
 0x2ba   : > { %754 = vmatpush.msra.mxu2 %v752_v22 }
 0x2bc   : > { %755 = vmatpush.msra.mxu2 %v751_v23 }
 0x2be   : > { %756 = vmatpush.msra.mxu2 %v750_v24 }
 0x2c0   : > { %757 = vmatpush.msra.mxu2 %v749_v25 }
 0x2c1   : > { %926 = vmatmul.msk.f32.gmra.mxu2 %vm558_vm10, %v1244_v55 }
 0x2c2   : > { %758 = vmatpush.msra.mxu2 %v748_v26 }
 0x2c4   : > { %759 = vmatpush.msra.mxu2 %v747_v27 }
 0x2c6   : > { %760 = vmatpush.msra.mxu2 %v746_v28 }
 0x2c8   : > { %761 = vmatpush.msra.mxu2 %v745_v29 }
 0x2ca   : > { %762 = vmatpush.msra.mxu2 %v744_v30 }
 0x2cc   : > { %763 = vmatpush.msra.mxu2 %v743_v31 }
 0x2ce   : > { %764 = vmatpush.msra.mxu2 %v742_v32 }
 0x2d0   : > { %765 = vmatpush.msra.mxu2 %v741_v34 }
 0x2d2   : > { %766 = vmatpush.msra.mxu2 %v740_v35 }
 0x2d4   : > { %767 = vmatpush.msra.mxu2 %v739_v36 }
 0x2d6   : > { %768 = vmatpush.msra.mxu2 %v738_v37 }
 0x2d8   : > { %769 = vmatpush.msra.mxu2 %v737_v40 }
 0x33c   : > { %v706_v33 = vpop.f32.mrf.mxu2 }
 0x33d   : > { %712 = vst [vmem:[%s440_s14] sm:$0xff] %v706_v33 }
 0x344   : > { %v709_v38 = vpop.f32.mrf.mxu2 }
 0x345   : > { %713 = vst [vmem:[%s440_s14 + $0x8] sm:$0xff] %v709_v38  ;;  %731 = vmatpush.msrb.mxu0 %v709_v38 }
 0x347   : > { %732 = vmatpush.msrb.mxu0 %v706_v33 }
 0x348   : > { %927 = vmatmul.msk.f32.vlgmr.msrb.gmra.mxu0 %vm558_vm10, %v1045_v39 }
 0x3c5   : > { %v734_v41 = vpop.f32.mrf.mxu0 }
 0x3c6   : > { %770 = vmatmul.f32.vlgmr.msra.gmra.mxu2 %v734_v41 }
 0x449   : > { %v771_v43 = vpop.f32.mrf.mxu2 }
 0x44a   : > { %v772_v44 = vadd.f32 %v771_v43, %v753_v42 }
 0x44c   : > { %774 = vst [vmem:[%s418_s25] sm:$0x1] %v772_v44 }
 0x44d   : > { %1008 = shalt.err (!%p1005_p4)
}
 0x44e   : > { %933 = dma.vmem_to_hbm [thread:$0]  (%p1144_p5), %s796_s29, 16, %s798_s1, %s781_s13  }
 0x44f PF: > { %p939_p7 = scmp.ge.s32.totalorder %s1043_s20, 2  ;;  %s817_s15 = sand.u32 1, %s1031_s17  }
 0x450   : > { %s818_s22 = scalar_lea.sflag [#allocation3], %s817_s15 }
 0x451   : > { %p936_p8 = pnand %p939_p7, %p1148_p6 }
 0x453   : > { %p937_p9 = pneg %p936_p8 }
 0x455   : > { %1026 = dma.done.wait (%p937_p9), %s818_s22, 16  }
 0x456   : > { %1028 = vsyncadd (%p937_p9), %s818_s22, 4294967280  ;;  %p22_p10 = scmp.ge.s32.totalorder %s1131_s23, 4   ;;  %s1422_s17 = smov %s1035_s18 }
 0x457   : > { %s1423_s18 = smov %s1039_s19  ;;  %s1424_s19 = smov %s1142_s26 }
 0x458   : > { %s1425_s20 = smov %s1131_s23  ;;  %24 = sbr.rel (!%p22_p10) target bundleno = 6 (0x6), region = 113 }
 0x45d   :  { %823 = vsyncpa [#allocation3], 1 }
 0x45e   :  { %825 = vsyncpa [#allocation3 + $0x1], 1 }

</bundles_post_ra>
